<compile_context>
chip_gen: v7x
topology: tpu7x:2x2x1
jax: 0.10.0
libtpu: 0.0.40
codegen_flags: <defaults>
</compile_context>

<pallas_src>
import jax
import jax.numpy as jnp
from jax.experimental import pallas as pl
from jax.experimental.pallas import tpu as pltpu  # noqa: F401  (kept for TPU-specific params if needed)

EPS = 1e-5


def bn_relu_conv1x1_kernel(x_ref, gb_ref, w_ref, o_ref):
    # x_ref:  (P, C_in)     f32   pixels on sublanes, channels on lanes
    # gb_ref: (2, C_in)     f32   row 0 = gamma, row 1 = beta
    # w_ref:  (C_in, C_out) bf16  pre-transposed 1x1 conv weight
    # o_ref:  (P, C_out)    f32   lane-dense output (C_out = 128)
    x = x_ref[...]
    inv_p = 1.0 / x.shape[0]

    # One-pass BN stats over the pixel axis (axis 0), biased variance (PyTorch train-mode norm).
    s = jnp.sum(x, axis=0, keepdims=True)          # (1, C_in)
    ssq = jnp.sum(x * x, axis=0, keepdims=True)    # (1, C_in)
    mean = s * inv_p
    var = ssq * inv_p - mean * mean
    inv_std = jax.lax.rsqrt(var + EPS)

    # Fold affine into a single scale/shift per channel.
    gamma = gb_ref[0:1, :]
    beta = gb_ref[1:2, :]
    scale = gamma * inv_std                        # (1, C_in)
    shift = beta - mean * scale                    # (1, C_in)

    # Normalize + affine + ReLU.
    xr = jnp.maximum(x * scale + shift, 0.0)

    # 1x1 conv == matmul on the MXU; bf16 operands, f32 accumulation.
    o_ref[...] = jnp.dot(
        xr.astype(jnp.bfloat16), w_ref[...], preferred_element_type=jnp.float32
    )


def bn_relu_conv1x1(x_nchw, gamma, beta, weight):
    """x_nchw: (N, C_in, H, W); gamma/beta: (C_in,); weight: (C_out, C_in, 1, 1)."""
    N, C_in, H, W = x_nchw.shape
    C_out = weight.shape[0]
    P = N * H * W

    # Glue: pixels-on-sublanes / channels-on-lanes layout.
    x2d = jnp.transpose(x_nchw, (0, 2, 3, 1)).reshape(P, C_in).astype(jnp.float32)
    w2d = weight.reshape(C_out, C_in).T.astype(jnp.bfloat16)      # (C_in, C_out)
    gb = jnp.stack([gamma, beta], axis=0).astype(jnp.float32)     # (2, C_in)

    out2d = pl.pallas_call(
        bn_relu_conv1x1_kernel,
        out_shape=jax.ShapeDtypeStruct((P, C_out), jnp.float32),
        in_specs=[
            pl.BlockSpec((P, C_in), lambda: (0, 0)),
            pl.BlockSpec((2, C_in), lambda: (0, 0)),
            pl.BlockSpec((C_in, C_out), lambda: (0, 0)),
        ],
        out_specs=pl.BlockSpec((P, C_out), lambda: (0, 0)),
    )(x2d, gb, w2d)

    # Glue: (P, C_out) -> (N, H, W, C_out) -> (N, C_out, H, W)
    return jnp.transpose(out2d.reshape(N, H, W, C_out), (0, 3, 1, 2))


def reference(x_nchw, gamma, beta, weight):
    # Pure-JAX f32 reference mirroring PyTorch train-mode BN + ReLU + 1x1 conv (no bias).
    mean = jnp.mean(x_nchw, axis=(0, 2, 3), keepdims=True)
    var = jnp.mean((x_nchw - mean) ** 2, axis=(0, 2, 3), keepdims=True)
    xn = (x_nchw - mean) * jax.lax.rsqrt(var + EPS)
    xn = xn * gamma[None, :, None, None] + beta[None, :, None, None]
    xr = jnp.maximum(xn, 0.0)
    w2d = weight.reshape(weight.shape[0], weight.shape[1])
    return jnp.einsum("oc,nchw->nohw", w2d, xr)


if __name__ == "__main__":
    # Shapes implied by the module: Conv2d(672 -> 128, 1x1); input (1, 672, 7, 7).
    N, C_in, H, W = 1, 672, 7, 7
    C_out = 128

    key = jax.random.PRNGKey(0)
    kx, kg, kb, kw = jax.random.split(key, 4)

    x = jax.random.normal(kx, (N, C_in, H, W), dtype=jnp.float32)
    gamma = 1.0 + 0.1 * jax.random.normal(kg, (C_in,), dtype=jnp.float32)
    beta = 0.1 * jax.random.normal(kb, (C_in,), dtype=jnp.float32)
    weight = 0.05 * jax.random.normal(kw, (C_out, C_in, 1, 1), dtype=jnp.float32)

    out = bn_relu_conv1x1(x, gamma, beta, weight)
    out = jax.block_until_ready(out)

    ref = reference(x, gamma, beta, weight)
    assert out.shape == (N, C_out, H, W), out.shape
    # Tolerance relaxed vs. pure-f32 because the matmul operands are bf16 (f32 accumulation).
    assert jnp.allclose(out, ref, atol=2e-2, rtol=2e-2), float(jnp.max(jnp.abs(out - ref)))

    print("KERNEL_OK")
</pallas_src>

<mosaic_0001>
module attributes {stable_mosaic.version = 11 : i64} {
  func.func @bn_relu_conv1x1_kernel(%arg0: memref<49x672xf32, #tpu.memory_space<vmem>>, %arg1: memref<2x672xf32, #tpu.memory_space<vmem>>, %arg2: memref<672x128xbf16, #tpu.memory_space<vmem>>, %arg3: memref<49x128xf32, #tpu.memory_space<vmem>>) attributes {dimension_semantics = [], scalar_prefetch = 0 : i64, scratch_operands = 0 : i64, tpu.core_type = #tpu.core_type<tc>} {
    %c0 = arith.constant 0 : index
    %c0_0 = arith.constant 0 : index
    %0 = vector.load %arg0[%c0, %c0_0] : memref<49x672xf32, #tpu.memory_space<vmem>>, vector<49x672xf32>
    %cst = arith.constant dense<0.000000e+00> : vector<672xf32>
    %1 = vector.multi_reduction <add>, %0, %cst [0] : vector<49x672xf32> to vector<672xf32>
    %2 = vector.shape_cast %1 : vector<672xf32> to vector<1x672xf32>
    %3 = arith.mulf %0, %0 : vector<49x672xf32>
    %cst_1 = arith.constant dense<0.000000e+00> : vector<672xf32>
    %4 = vector.multi_reduction <add>, %3, %cst_1 [0] : vector<49x672xf32> to vector<672xf32>
    %5 = vector.shape_cast %4 : vector<672xf32> to vector<1x672xf32>
    %cst_2 = arith.constant 0.0204081628 : f32
    %6 = vector.broadcast %cst_2 : f32 to vector<1x672xf32>
    %7 = arith.mulf %2, %6 : vector<1x672xf32>
    %cst_3 = arith.constant 0.0204081628 : f32
    %8 = vector.broadcast %cst_3 : f32 to vector<1x672xf32>
    %9 = arith.mulf %5, %8 : vector<1x672xf32>
    %10 = arith.mulf %7, %7 : vector<1x672xf32>
    %11 = arith.subf %9, %10 : vector<1x672xf32>
    %cst_4 = arith.constant 9.99999974E-6 : f32
    %12 = vector.broadcast %cst_4 : f32 to vector<1x672xf32>
    %13 = arith.addf %11, %12 : vector<1x672xf32>
    %14 = math.rsqrt %13 : vector<1x672xf32>
    %c0_5 = arith.constant 0 : index
    %c0_6 = arith.constant 0 : index
    %15 = vector.load %arg1[%c0_5, %c0_6] : memref<2x672xf32, #tpu.memory_space<vmem>>, vector<1x672xf32>
    %c1 = arith.constant 1 : index
    %c0_7 = arith.constant 0 : index
    %16 = vector.load %arg1[%c1, %c0_7] : memref<2x672xf32, #tpu.memory_space<vmem>>, vector<1x672xf32>
    %17 = arith.mulf %15, %14 : vector<1x672xf32>
    %18 = arith.mulf %7, %17 : vector<1x672xf32>
    %19 = arith.subf %16, %18 : vector<1x672xf32>
    %20 = vector.broadcast %17 : vector<1x672xf32> to vector<49x672xf32>
    %21 = arith.mulf %0, %20 : vector<49x672xf32>
    %22 = vector.broadcast %19 : vector<1x672xf32> to vector<49x672xf32>
    %23 = arith.addf %21, %22 : vector<49x672xf32>
    %cst_8 = arith.constant 0.000000e+00 : f32
    %24 = vector.broadcast %cst_8 : f32 to vector<49x672xf32>
    %25 = arith.maximumf %23, %24 : vector<49x672xf32>
    %26 = arith.truncf %25 : vector<49x672xf32> to vector<49x672xbf16>
    %c0_9 = arith.constant 0 : index
    %c0_10 = arith.constant 0 : index
    %27 = vector.load %arg2[%c0_9, %c0_10] : memref<672x128xbf16, #tpu.memory_space<vmem>>, vector<672x128xbf16>
    %cst_11 = arith.constant dense<0.000000e+00> : vector<49x128xf32>
    %28 = tpu.matmul %26, %27, %cst_11 {dimension_numbers = #tpu.dot_dimension_numbers<[1], [0], [0], [1], [0, 0, 1, 1], [], []>} : vector<49x672xbf16>, vector<672x128xbf16>, vector<49x128xf32> -> vector<49x128xf32>
    %c0_12 = arith.constant 0 : index
    %c0_13 = arith.constant 0 : index
    %29 = vector.load %arg3[%c0_12, %c0_13] : memref<49x128xf32, #tpu.memory_space<vmem>>, vector<49x128xf32>
    tpu.vector_store %arg3[%c0_12, %c0_13], %28 {strides = array<i32>} : memref<49x128xf32, #tpu.memory_space<vmem>>, vector<49x128xf32>,
    return
  }
}

</mosaic_0001>

<bundles_post_ra>
// kernel: tpu_custom_call.1
= control target key start
LH: loop header
LB: loop body
LE: loop exit
PB: predicated region body
PF: predicated region fallthrough
CT: control target
= control target key end

     0   :  { %8 = vsyncpa [#allocation3], 0  ;;  %s2154_s0 = inlined_call_operand.hbm [shape: f32[49,672], index: 0, kind: input, shape index: {}]   ;;  %s2155_s1 = inlined_call_operand.hbm [shape: f32[2,672], index: 1, kind: input, shape index: {}]   ;;  %s2156_s2 = inlined_call_operand.hbm [shape: bf16[672,128], index: 2, kind: input, shape index: {}]   ;;  %s2157_s3 = inlined_call_operand.hbm [shape: f32[49,128], index: 3, kind: output, shape index: {}]  }
   0x1   :  { %9 = vsyncpa [#allocation6], 0 }
   0x2   :  { %10 = vsyncpa [#allocation4], 0  ;;  %s1538_s12 = smov [#allocation5]   ;;  %s1539_s14 = smov [#allocation2]  }
   0x3   :  { %s29_s13 = sshll.u32 %s1538_s12, 4  ;;  %s16_s15 = sshll.u32 %s1539_s14, 4  ;;  %s30_s13 = int_to_ptr.vmem [resolvable:$true] %s29_s13  ;;  %s1570_s15 = int_to_ptr.vmem [resolvable:$true] %s16_s15 }
   0x4   :  { %s1444_s18 = scalar_lea.hbm %s2155_s1, 192 }
   0x5   :  { %p1445_p0 = scmp.ne.s32.totalorder %s2155_s1, %s1444_s18  ;;  %p1448_p1 = scmp.lt.u32.totalorder %s1444_s18, %s2155_s1 }
   0x7   :  { %p1450_p2 = pnand %p1448_p1, %p1445_p0 }
   0x9   :  { %1453 = shalt.err (!%p1450_p2)
}
   0xa   :  { %s1454_s23 = scalar_lea.vmem %s30_s13, 192  ;;  %p1459_p4 = scmp.lt.s32.totalorder %s30_s13, %s30_s13 }
   0xb   :  { %p1455_p3 = scmp.ne.s32.totalorder %s30_s13, %s1454_s23  ;;  %p1460_p5 = scmp.lt.s32.totalorder %s1454_s23, %s1454_s23 }
   0xd   :  { %p1461_p6 = por %p1460_p5, %p1459_p4 }
   0xf   :  { %p1462_p7 = pnand %p1461_p6, %p1455_p3 }
  0x11   :  { %1465 = shalt.err (!%p1462_p7)
}
  0x12   :  { %32 = dma.hbm_to_vmem [thread:$0]  %s2155_s1, 192, %s30_s13, [#allocation6]  }
  0x13   :  { %s1466_s28 = scalar_lea.hbm %s2154_s0, 5376 }
  0x14   :  { %p1467_p8 = scmp.ne.s32.totalorder %s2154_s0, %s1466_s28  ;;  %p1470_p9 = scmp.lt.u32.totalorder %s1466_s28, %s2154_s0 }
  0x16   :  { %p1472_p10 = pnand %p1470_p9, %p1467_p8 }
  0x18   :  { %1475 = shalt.err (!%p1472_p10)
}
  0x19   :  { %s1476_s6 = scalar_lea.vmem %s1570_s15, 5376  ;;  %p1481_p12 = scmp.lt.s32.totalorder %s1570_s15, %s1570_s15 }
  0x1a   :  { %p1477_p11 = scmp.ne.s32.totalorder %s1570_s15, %s1476_s6  ;;  %p1482_p13 = scmp.lt.s32.totalorder %s1476_s6, %s1476_s6 }
  0x1c   :  { %p1483_p0 = por %p1482_p13, %p1481_p12 }
  0x1e   :  { %p1484_p1 = pnand %p1483_p0, %p1477_p11 }
  0x20   :  { %1487 = shalt.err (!%p1484_p1)
}
  0x21   :  { %s1540_s1 = smov 768   ;;  %s1541_s7 = smov 48  }
  0x22   :  { %22 = dma.hbm_to_vmem [thread:$0]  %s2154_s0, 5376, %s1570_s15, [#allocation3], %s1540_s1, %s1540_s1, %s1541_s7  }
  0x23   :  { %s1542_s10 = smov [#allocation7]   ;;  %s1488_s14 = scalar_lea.hbm %s2156_s2, 5376 }
  0x24   :  { %s38_s11 = sshll.u32 %s1542_s10, 4  ;;  %p1489_p2 = scmp.ne.s32.totalorder %s2156_s2, %s1488_s14  ;;  %s39_s11 = int_to_ptr.vmem [resolvable:$true] %s38_s11 }
  0x25   :  { %p1492_p3 = scmp.lt.u32.totalorder %s1488_s14, %s2156_s2 }
  0x27   :  { %p1494_p4 = pnand %p1492_p3, %p1489_p2 }
  0x29   :  { %1497 = shalt.err (!%p1494_p4)
}
  0x2a   :  { %s1498_s20 = scalar_lea.vmem %s39_s11, 5376  ;;  %p1503_p6 = scmp.lt.s32.totalorder %s39_s11, %s39_s11 }
  0x2b   :  { %p1499_p5 = scmp.ne.s32.totalorder %s39_s11, %s1498_s20  ;;  %p1504_p7 = scmp.lt.s32.totalorder %s1498_s20, %s1498_s20 }
  0x2d   :  { %p1505_p8 = por %p1504_p7, %p1503_p6 }
  0x2f   :  { %p1506_p9 = pnand %p1505_p8, %p1499_p5 }
  0x31   :  { %1509 = shalt.err (!%p1506_p9)
}
  0x32   :  { %s1543_s0 = smov 64   ;;  %s1544_s15 = smov 4  }
  0x33   :  { %44 = dma.hbm_to_vmem [thread:$0]  %s2156_s2, 5376, %s39_s11, [#allocation6], %s1543_s0, %s1543_s0, %s1544_s15  }
  0x34   :  { %1532 = dma.done.wait [#allocation3], 5376  }
  0x35   :  { %1533 = vsyncadd [#allocation3], 4294961920 }
  0x36   :  { %1534 = dma.done.wait [#allocation6], 5568  }
  0x37   :  { %1535 = vsyncadd [#allocation6], 4294961728  ;;  %v1386_v0 = vld [vmem:[#allocation7 + $0x40] sm:$0xff]   ;;  %v1390_v4 = vld [vmem:[#allocation7 + $0x48] sm:$0xff]   ;;  %vm163_vm0 = vcmask 261120   ;;  %v2158_v38 = vmov 0  }
  0x38   :  { %v1387_v1 = vld [vmem:[#allocation7 + $0xc0] sm:$0xff]   ;;  %1274 = vmatprep.subr.bf16.mxu0 %v1386_v0  ;;  %v1391_v5 = vld [vmem:[#allocation7 + $0xc8] sm:$0xff]   ;;  %v1394_v8 = vld [vmem:[#allocation7 + $0x50] sm:$0xff]   ;;  %vm102_vm1 = vcmask 1040384   ;;  %vm175_vm2 = vcmask 253952   ;;  %s1547_s2 = smov [#allocation8]  }
  0x39   :  { %v1388_v2 = vld [vmem:[#allocation7] sm:$0xff]   ;;  %1314 = vmatprep.subr.bf16.mxu1 %v1387_v1  ;;  %v1392_v6 = vld [vmem:[#allocation7 + $0x8] sm:$0xff]   ;;  %v1395_v9 = vld [vmem:[#allocation7 + $0xd0] sm:$0xff]   ;;  %s1215_s23 = sshll.u32 %s1547_s2, 4  ;;  %s1216_s23 = int_to_ptr.vmem [resolvable:$true] %s1215_s23 }
  0x3a   :  { %v1389_v3 = vld [vmem:[#allocation7 + $0x80] sm:$0xff]   ;;  %1275 = vmatpush3.bf16.msra.mxu0 %v1388_v2  ;;  %v1393_v7 = vld [vmem:[#allocation7 + $0x88] sm:$0xff]   ;;  %v1396_v10 = vld [vmem:[#allocation7 + $0x10] sm:$0xff]   ;;  %s1510_s24 = scalar_lea.vmem %s1216_s23, 896  ;;  %p1515_p11 = scmp.lt.s32.totalorder %s1216_s23, %s1216_s23 }
  0x3b   :  { %1315 = vmatpush3.bf16.msra.mxu1 %v1389_v3  ;;  %1276 = vmatprep.subr.bf16.mxu0 %v1390_v4  ;;  %v1397_v11 = vld [vmem:[#allocation7 + $0x90] sm:$0xff]   ;;  %v1398_v12 = vld [vmem:[#allocation7 + $0x58] sm:$0xff]   ;;  %v1402_v16 = vld [vmem:[#allocation7 + $0x60] sm:$0xff]   ;;  %p1511_p10 = scmp.ne.s32.totalorder %s1216_s23, %s1510_s24  ;;  %p1516_p12 = scmp.lt.s32.totalorder %s1510_s24, %s1510_s24 }
  0x3c   :  { %1316 = vmatprep.subr.bf16.mxu1 %v1391_v5  ;;  %v1399_v13 = vld [vmem:[#allocation7 + $0xd8] sm:$0xff]   ;;  %v1403_v17 = vld [vmem:[#allocation7 + $0xe0] sm:$0xff]   ;;  %v1406_v20 = vld [vmem:[#allocation7 + $0x68] sm:$0xff]  }
  0x3d   :  { %v1400_v14 = vld [vmem:[#allocation7 + $0x18] sm:$0xff]   ;;  %v1404_v18 = vld [vmem:[#allocation7 + $0x20] sm:$0xff]   ;;  %v1407_v21 = vld [vmem:[#allocation7 + $0xe8] sm:$0xff]   ;;  %p1517_p13 = por %p1516_p12, %p1515_p11 }
  0x3e   :  { %1277 = vmatpush3.bf16.msra.mxu0 %v1392_v6  ;;  %v1401_v15 = vld [vmem:[#allocation7 + $0x98] sm:$0xff]   ;;  %v1405_v19 = vld [vmem:[#allocation7 + $0xa0] sm:$0xff]   ;;  %v1408_v22 = vld [vmem:[#allocation7 + $0x28] sm:$0xff]  }
  0x3f   :  { %1317 = vmatpush3.bf16.msra.mxu1 %v1393_v7  ;;  %1278 = vmatprep.subr.bf16.mxu0 %v1394_v8  ;;  %v1409_v23 = vld [vmem:[#allocation7 + $0xa8] sm:$0xff]   ;;  %v1410_v24 = vld [vmem:[#allocation7 + $0x70] sm:$0xff]   ;;  %v1414_v28 = vld [vmem:[#allocation7 + $0x78] sm:$0xff]   ;;  %p1518_p0 = pnand %p1517_p13, %p1511_p10 }
  0x40   :  { %1318 = vmatprep.subr.bf16.mxu1 %v1395_v9  ;;  %v1411_v25 = vld [vmem:[#allocation7 + $0xf0] sm:$0xff]   ;;  %v1415_v29 = vld [vmem:[#allocation7 + $0xf8] sm:$0xff]   ;;  %v1613_v32 = vld [vmem:[#allocation2] sm:$0xff] }
  0x41   :  { %v1412_v26 = vld [vmem:[#allocation7 + $0x30] sm:$0xff]   ;;  %v1416_v30 = vld [vmem:[#allocation7 + $0x38] sm:$0xff]   ;;  %2189 = vst [vmem:[#allocation12_spill] sm:$0xff] %v1613_v32  ;;  %v59_v36 = vld [vmem:[#allocation2 + $0x20] sm:$0xff]  ;;  %v1634_v43 = vmul.f32 %v1613_v32, %v1613_v32 }
  0x42   :  { %1279 = vmatpush3.bf16.msra.mxu0 %v1396_v10  ;;  %v1413_v27 = vld [vmem:[#allocation7 + $0xb0] sm:$0xff]   ;;  %v1417_v31 = vld [vmem:[#allocation7 + $0xb8] sm:$0xff]   ;;  %v1628_v41 = vld [vmem:[#allocation2 + $0x40] sm:$0xff]  ;;  %v1691_v8 = vmul.f32 %v59_v36, %v59_v36 }
  0x43   :  { %1319 = vmatpush3.bf16.msra.mxu1 %v1397_v11  ;;  %1280 = vmatprep.subr.bf16.mxu0 %v1398_v12  ;;  %v1615_v33 = vld [vmem:[#allocation2 + $0x8] sm:$0xff]  ;;  %v1617_v34 = vld [vmem:[#allocation2 + $0x10] sm:$0xff]  ;;  %v1619_v35 = vld [vmem:[#allocation2 + $0x18] sm:$0xff]  ;;  %2196 = vst [vmem:[#allocation19_spill] sm:$0xff] %v1628_v41 }
  0x44   :  { %1320 = vmatprep.subr.bf16.mxu1 %v1399_v13  ;;  %2190 = vst [vmem:[#allocation13_spill] sm:$0xff] %v1615_v33  ;;  %2191 = vst [vmem:[#allocation14_spill] sm:$0xff] %v1617_v34  ;;  %v1621_v37 = vld [vmem:[#allocation2 + $0x28] sm:$0xff]  ;;  %v1624_v39 = vld [vmem:[#allocation2 + $0x30] sm:$0xff]  ;;  %v1638_v44 = vmul.f32 %v1615_v33, %v1615_v33  ;;  %v124_v50 = vadd.f32 %v1628_v41, %v1617_v34  ;;  %v1655_v51 = vmul.f32 %v1617_v34, %v1617_v34 }
  0x45   :  { %2192 = vst [vmem:[#allocation15_spill] sm:$0xff] %v1619_v35  ;;  %2193 = vst [vmem:[#allocation16_spill] sm:$0xff] %v1621_v37  ;;  %v1626_v40 = vld [vmem:[#allocation2 + $0x38] sm:$0xff]  ;;  %v164_v42 = vsel %vm163_vm0, %v1621_v37, 0.0  ;;  %v1641_v45 = vld [vmem:[#allocation2 + $0x48] sm:$0xff]  ;;  %v97_v48 = vadd.f32 %v1624_v39, %v1613_v32  ;;  %v1670_v58 = vmul.f32 %v1619_v35, %v1619_v35 }
  0x46   :  { %1281 = vmatpush3.bf16.msra.mxu0 %v1400_v14  ;;  %2194 = vst [vmem:[#allocation17_spill] sm:$0xff] %v1624_v39  ;;  %2195 = vst [vmem:[#allocation18_spill] sm:$0xff] %v1626_v40  ;;  %v1643_v46 = vld [vmem:[#allocation2 + $0x50] sm:$0xff]  ;;  %v1645_v47 = vld [vmem:[#allocation2 + $0x58] sm:$0xff]  ;;  %v111_v49 = vadd.f32 %v1626_v40, %v1615_v33  ;;  %v137_v55 = vadd.f32 %v1641_v45, %v1619_v35 }
  0x47   :  { %1321 = vmatpush3.bf16.msra.mxu1 %v1401_v15  ;;  %1282 = vmatprep.subr.bf16.mxu0 %v1402_v16  ;;  %2197 = vst [vmem:[#allocation20_spill] sm:$0xff] %v1641_v45  ;;  %2198 = vst [vmem:[#allocation21_spill] sm:$0xff] %v1645_v47  ;;  %v1657_v52 = vld [vmem:[#allocation2 + $0x60] sm:$0xff]  ;;  %v1659_v53 = vld [vmem:[#allocation2 + $0x68] sm:$0xff]  ;;  %v150_v56 = vadd.f32 %v1643_v46, %v59_v36  ;;  %v165_v57 = vsel %vm163_vm0, %v1645_v47, 0.0 }
  0x48   :  { %1322 = vmatprep.subr.bf16.mxu1 %v1403_v17  ;;  %2199 = vst [vmem:[#allocation22_spill] sm:$0xff] %v1657_v52  ;;  %2200 = vst [vmem:[#allocation23_spill] sm:$0xff] %v1659_v53  ;;  %v1661_v54 = vld [vmem:[#allocation2 + $0x70] sm:$0xff]  ;;  %v1672_v59 = vld [vmem:[#allocation2 + $0x78] sm:$0xff]  ;;  %v98_v62 = vadd.f32 %v97_v48, %v1657_v52  ;;  %v112_v63 = vadd.f32 %v111_v49, %v1659_v53  ;;  %v166_v1 = vadd.f32 %v165_v57, %v164_v42 }
  0x49   :  { %2201 = vst [vmem:[#allocation24_spill] sm:$0xff] %v1661_v54  ;;  %2202 = vst [vmem:[#allocation25_spill] sm:$0xff] %v1672_v59  ;;  %v1674_v60 = vld [vmem:[#allocation2 + $0x80] sm:$0xff]  ;;  %v1676_v61 = vld [vmem:[#allocation2 + $0x88] sm:$0xff]  ;;  %v125_v0 = vadd.f32 %v124_v50, %v1661_v54  ;;  %v138_v5 = vadd.f32 %v137_v55, %v1672_v59  ;;  %v1737_v50 = vmul.f32 %v1624_v39, %v1624_v39 }
  0x4a   :  { %1283 = vmatpush3.bf16.msra.mxu0 %v1404_v18  ;;  %2203 = vst [vmem:[#allocation26_spill] sm:$0xff] %v1676_v61  ;;  %v1681_v2 = vld [vmem:[#allocation2 + $0x90] sm:$0xff]  ;;  %v1683_v3 = vld [vmem:[#allocation2 + $0x98] sm:$0xff]  ;;  %v1685_v4 = vld [vmem:[#allocation2 + $0xa0] sm:$0xff]  ;;  %v151_v6 = vadd.f32 %v150_v56, %v1674_v60  ;;  %v167_v7 = vsel %vm163_vm0, %v1676_v61, 0.0  ;;  %v1802_v32 = vmul.f32 %v1659_v53, %v1659_v53 }
  0x4b   :  { %1323 = vmatpush3.bf16.msra.mxu1 %v1405_v19  ;;  %1284 = vmatprep.subr.bf16.mxu0 %v1406_v20  ;;  %2204 = vst [vmem:[#allocation27_spill] sm:$0xff] %v1681_v2  ;;  %v1693_v9 = vld [vmem:[#allocation2 + $0xa8] sm:$0xff]  ;;  %v1695_v10 = vld [vmem:[#allocation2 + $0xb0] sm:$0xff]  ;;  %v1697_v11 = vld [vmem:[#allocation2 + $0xb8] sm:$0xff]  ;;  %v99_v12 = vadd.f32 %v98_v62, %v1681_v2  ;;  %v113_v13 = vadd.f32 %v112_v63, %v1683_v3 }
  0x4c   :  { %1324 = vmatprep.subr.bf16.mxu1 %v1407_v21  ;;  %2205 = vst [vmem:[#allocation28_spill] sm:$0xff] %v1697_v11  ;;  %v126_v14 = vadd.f32 %v125_v0, %v1685_v4  ;;  %v168_v15 = vadd.f32 %v167_v7, %v166_v1  ;;  %v1702_v16 = vld [vmem:[#allocation2 + $0xc0] sm:$0xff]  ;;  %v1704_v17 = vld [vmem:[#allocation2 + $0xc8] sm:$0xff]  ;;  %v1706_v18 = vld [vmem:[#allocation2 + $0xd0] sm:$0xff]  ;;  %v139_v19 = vadd.f32 %v138_v5, %v1693_v9  ;;  %v169_v21 = vsel %vm163_vm0, %v1697_v11, 0.0 }
  0x4d   :  { %2206 = vst [vmem:[#allocation29_spill] sm:$0xff] %v1706_v18  ;;  %v152_v20 = vadd.f32 %v151_v6, %v1695_v10  ;;  %v1729_v36 = vld [vmem:[#allocation2 + $0x100] sm:$0xff]  ;;  %v1739_v55 = vld [vmem:[#allocation2 + $0x108] sm:$0xff]  ;;  %v1741_v56 = vld [vmem:[#allocation2 + $0x110] sm:$0xff]  ;;  %v1750_v1 = vmul.f32 %v1626_v40, %v1626_v40 }
  0x4e   :  { %1285 = vmatpush3.bf16.msra.mxu0 %v1408_v22  ;;  %v1714_v22 = vmul.f32 %v1621_v37, %v1621_v37  ;;  %2210 = vst [vmem:[#allocation33_spill] sm:$0xff] %v1729_v36  ;;  %2211 = vst [vmem:[#allocation34_spill] sm:$0xff] %v1741_v56  ;;  %v1743_v57 = vld [vmem:[#allocation2 + $0x118] sm:$0xff]  ;;  %v1752_v5 = vld [vmem:[#allocation2 + $0x120] sm:$0x1] }
  0x4f   :  { %1325 = vmatpush3.bf16.msra.mxu1 %v1409_v23  ;;  %1286 = vmatprep.subr.bf16.mxu0 %v1410_v24  ;;  %v1716_v23 = vld [vmem:[#allocation2 + $0xd8] sm:$0xff]  ;;  %v1718_v24 = vld [vmem:[#allocation2 + $0xe0] sm:$0xff]  ;;  %2212 = vst [vmem:[#allocation35_spill] sm:$0xff] %v1743_v57  ;;  %2213 = vst [vmem:[#allocation36_spill] sm:$0xff] %v1752_v5  ;;  %v173_v34 = vsel %vm163_vm0, %v1743_v57, 0.0 }
  0x50   :  { %1326 = vmatprep.subr.bf16.mxu1 %v1411_v25  ;;  %2207 = vst [vmem:[#allocation30_spill] sm:$0xff] %v1714_v22  ;;  %2208 = vst [vmem:[#allocation31_spill] sm:$0xff] %v1718_v24  ;;  %v1720_v25 = vld [vmem:[#allocation2 + $0xe8] sm:$0xff]  ;;  %v140_v42 = vadd.f32 %v139_v19, %v1716_v23  ;;  %v153_v48 = vadd.f32 %v152_v20, %v1718_v24  ;;  %v1756_v7 = vld [vmem:[#allocation2 + $0x130] sm:$0x1]  ;;  %v1814_v22 = vmul.f32 %v1674_v60, %v1674_v60 }
  0x51   :  { %2209 = vst [vmem:[#allocation32_spill] sm:$0xff] %v1720_v25  ;;  %v171_v49 = vsel %vm163_vm0, %v1720_v25, 0.0  ;;  %v1754_v6 = vld [vmem:[#allocation2 + $0x128] sm:$0x1]  ;;  %2215 = vst [vmem:[#allocation38_spill] sm:$0xff] %v1756_v7  ;;  %v129_v37 = vsel %vm102_vm1, %v1756_v7, 0.0 }
  0x52   :  { %1287 = vmatpush3.bf16.msra.mxu0 %v1412_v26  ;;  %v100_v26 = vadd.f32 %v99_v12, %v1702_v16  ;;  %2214 = vst [vmem:[#allocation37_spill] sm:$0xff] %v1754_v6  ;;  %v141_v12 = vadd.f32 %v140_v42, %v1739_v55  ;;  %v1771_v19 = vld [vmem:[#allocation2 + $0x138] sm:$0x1]  ;;  %v1773_v20 = vld [vmem:[#allocation2 + $0x140] sm:$0x1]  ;;  %v1784_v42 = vmul.f32 %v1657_v52, %v1657_v52 }
  0x53   :  { %1327 = vmatpush3.bf16.msra.mxu1 %v1413_v27  ;;  %1288 = vmatprep.subr.bf16.mxu0 %v1414_v28  ;;  %v114_v27 = vadd.f32 %v113_v13, %v1704_v17  ;;  %v127_v28 = vadd.f32 %v126_v14, %v1706_v18  ;;  %v1761_v13 = vmul.f32 %v1628_v41, %v1628_v41  ;;  %v155_v52 = vsel %vm102_vm1, %v1773_v20, 0.0 }
  0x54   :  { %1328 = vmatprep.subr.bf16.mxu1 %v1415_v29  ;;  %v170_v29 = vadd.f32 %v169_v21, %v168_v15  ;;  %v1765_v14 = vmul.f32 %v1641_v45, %v1641_v45  ;;  %v1769_v15 = vmul.f32 %v1643_v46, %v1643_v46  ;;  %2216 = vst [vmem:[#allocation39_spill] sm:$0xff] %v1771_v19  ;;  %2217 = vst [vmem:[#allocation40_spill] sm:$0xff] %v1773_v20  ;;  %v1775_v21 = vld [vmem:[#allocation2 + $0x148] sm:$0x1] }
  0x55   :  { %v128_v0 = vadd.f32 %v127_v28, %v1729_v36  ;;  %2218 = vst [vmem:[#allocation41_spill] sm:$0xff] %v1775_v21  ;;  %v1780_v28 = vmul.f32 %v1645_v47, %v1645_v47  ;;  %v103_v46 = vsel %vm102_vm1, %v1752_v5, 0.0  ;;  %v176_v39 = vsel %vm175_vm2, %v1775_v21, 0.0 }
  0x56   :  { %1289 = vmatpush3.bf16.msra.mxu0 %v1416_v30  ;;  %v1725_v30 = vld [vmem:[#allocation2 + $0xf0] sm:$0xff] }
  0x57   :  { %1329 = vmatpush3.bf16.msra.mxu1 %v1417_v31  ;;  %1139 = vmatprep.subr.bf16.mxu0 %v2158_v38  ;;  %v1727_v31 = vld [vmem:[#allocation2 + $0xf8] sm:$0xff]  ;;  %v101_v62 = vadd.f32 %v100_v26, %v1725_v30  ;;  %v154_v26 = vadd.f32 %v153_v48, %v1741_v56  ;;  %2219 = vst [vmem:[#allocation42_spill] sm:$0xff] %v1780_v28 }
  0x58   :  { %1354 = vmatprep.subr.bf16.mxu1 %v2158_v38  ;;  %v115_v63 = vadd.f32 %v114_v27, %v1727_v31  ;;  %v172_v27 = vadd.f32 %v171_v49, %v170_v29  ;;  %v116_v38 = vsel %vm102_vm1, %v1754_v6, 0.0  ;;  %v142_v29 = vsel %vm102_vm1, %v1771_v19, 0.0 }
  0x59   :  { %v104_v48 = vadd.f32 %v103_v46, %v101_v62  ;;  %v130_v47 = vadd.f32 %v129_v37, %v128_v0  ;;  %v143_v41 = vadd.f32 %v142_v29, %v141_v12  ;;  %v1810_v0 = vmul.f32 %v1672_v59, %v1672_v59 }
  0x5a   :  { %v117_v49 = vadd.f32 %v116_v38, %v115_v63  ;;  %v156_v38 = vadd.f32 %v155_v52, %v154_v26  ;;  %v174_v37 = vadd.f32 %v173_v34, %v172_v27  ;;  %v1806_v63 = vmul.f32 %v1661_v54, %v1661_v54 }
  0x5b   :  { %v105_v45 = vrot.slane %v104_v48, 4  ;;  %v131_v40 = vrot.slane %v130_v47, 4  ;;  %v144_v62 = vrot.slane %v143_v41, 4  ;;  %2220 = vst [vmem:[#allocation43_spill] sm:$0xff] %v1810_v0  ;;  %v1818_v34 = vmul.f32 %v1676_v61, %v1676_v61 }
  0x5c   :  { %v118_v35 = vrot.slane %v117_v49, 4  ;;  %v157_v53 = vrot.slane %v156_v38, 4  ;;  %v177_v28 = vadd.f32 %v176_v39, %v174_v37  ;;  %v203_v39 = vmul.f32 %v1683_v3, %v1683_v3 }
  0x5d   :  { %v106_v12 = vadd.f32 %v105_v45, %v104_v48  ;;  %v132_v29 = vadd.f32 %v131_v40, %v130_v47  ;;  %v145_v33 = vadd.f32 %v144_v62, %v143_v41  ;;  %2221 = vst [vmem:[#allocation44_spill] sm:$0xff] %v1818_v34  ;;  %v205_v62 = vmul.f32 %v1693_v9, %v1693_v9 }
  0x5e   :  { %v119_v46 = vadd.f32 %v118_v35, %v117_v49  ;;  %v158_v59 = vadd.f32 %v157_v53, %v156_v38  ;;  %v178_v0 = vrot.slane %v177_v28, 4  ;;  %v202_v35 = vmul.f32 %v1681_v2, %v1681_v2 }
  0x5f   :  { %v107_v52 = vrot.slane %v106_v12, 2  ;;  %v133_v27 = vrot.slane %v132_v29, 2  ;;  %v146_v54 = vrot.slane %v145_v33, 2  ;;  %v204_v49 = vmul.f32 %v1685_v4, %v1685_v4 }
  0x60   :  { %v120_v26 = vrot.slane %v119_v46, 2  ;;  %v159_v60 = vrot.slane %v158_v59, 2  ;;  %v179_v48 = vadd.f32 %v178_v0, %v177_v28  ;;  %v209_v28 = vmul.f32 %v1704_v17, %v1704_v17 }
  0x61   :  { %v108_v40 = vadd.f32 %v107_v52, %v106_v12  ;;  %v134_v45 = vadd.f32 %v133_v27, %v132_v29  ;;  %v147_v47 = vadd.f32 %v146_v54, %v145_v33  ;;  %v206_v12 = vmul.f32 %v1695_v10, %v1695_v10 }
  0x62   :  { %v121_v41 = vadd.f32 %v120_v26, %v119_v46  ;;  %v1828_v2 = vadd.f32 %v159_v60, %v158_v59  ;;  %v180_v34 = vrot.slane %v179_v48, 2  ;;  %v207_v33 = vmul.f32 %v1697_v11, %v1697_v11 }
  0x63   :  { %v109_v53 = vrot.slane %v108_v40, 1  ;;  %v135_v37 = vrot.slane %v134_v45, 1  ;;  %v148_v61 = vrot.slane %v147_v47, 1  ;;  %v208_v54 = vmul.f32 %v1702_v16, %v1702_v16 }
  0x64   :  { %v122_v38 = vrot.slane %v121_v41, 1  ;;  %v210_v0 = vmul.f32 %v1706_v18, %v1706_v18  ;;  %v211_v59 = vmul.f32 %v1716_v23, %v1716_v23  ;;  %v1848_v52 = vadd.f32 %v180_v34, %v179_v48 }
  0x65   :  { %v1842_v46 = vadd.f32 %v109_v53, %v108_v40  ;;  %v1846_v10 = vadd.f32 %v135_v37, %v134_v45  ;;  %v1850_v26 = vadd.f32 %v148_v61, %v147_v47  ;;  %v161_v27 = vrot.slane %v1828_v2, 1 }
  0x66   :  { %v1844_v29 = vadd.f32 %v122_v38, %v121_v41  ;;  %v212_v60 = vmul.f32 %v1718_v24, %v1718_v24  ;;  %v213_v11 = vmul.f32 %v1720_v25, %v1720_v25  ;;  %v214_v40 = vmul.f32 %v1725_v30, %v1725_v30 }
  0x67   :  { %v215_v41 = vmul.f32 %v1727_v31, %v1727_v31  ;;  %v216_v34 = vmul.f32 %v1729_v36, %v1729_v36  ;;  %v217_v61 = vmul.f32 %v1739_v55, %v1739_v55  ;;  %v182_v45 = vrot.slane %v1848_v52, 1 }
  0x68   :  { %v220_v47 = vmul.f32 %v1752_v5, %v1752_v5  ;;  %v221_v48 = vmul.f32 %v1754_v6, %v1754_v6  ;;  %v222_v53 = vmul.f32 %v1756_v7, %v1756_v7  ;;  %v218_v38 = vmul.f32 %v1741_v56, %v1741_v56 }
  0x69   :  { %v219_v37 = vmul.f32 %v1743_v57, %v1743_v57  ;;  %v223_v24 = vmul.f32 %v1771_v19, %v1771_v19  ;;  %v226_v25 = vadd.f32 %v1737_v50, %v1634_v43  ;;  %v224_v5 = vmul.f32 %v1773_v20, %v1773_v20 }
  0x6a   :  { %v225_v6 = vmul.f32 %v1775_v21, %v1775_v21  ;;  %v239_v7 = vadd.f32 %v1750_v1, %v1638_v44  ;;  %v252_v56 = vadd.f32 %v1761_v13, %v1655_v51  ;;  %v231_v36 = vsel %vm102_vm1, %v220_v47, 0.0  ;;  %v2222_v51 = vld [vmem:[#allocation43_spill] sm:$0xff]  ;;  %v2224_v47 = vld [vmem:[#allocation42_spill] sm:$0xff] }
  0x6b   :  { %v227_v57 = vadd.f32 %v226_v25, %v1784_v42  ;;  %v244_v19 = vsel %vm102_vm1, %v221_v48, 0.0  ;;  %v265_v43 = vadd.f32 %v1765_v14, %v1670_v58  ;;  %v257_v21 = vsel %vm102_vm1, %v222_v53, 0.0  ;;  %v2223_v25 = vld [vmem:[#allocation30_spill] sm:$0xff] }
  0x6c   :  { %v240_v50 = vadd.f32 %v239_v7, %v1802_v32  ;;  %v253_v20 = vadd.f32 %v252_v56, %v1806_v63  ;;  %v278_v44 = vadd.f32 %v1769_v15, %v1691_v8  ;;  %v291_v42 = vsel %vm163_vm0, %v2223_v25, 0.0  ;;  %v2225_v63 = vld [vmem:[#allocation44_spill] sm:$0xff] }
  0x6d   :  { %v228_v1 = vadd.f32 %v227_v57, %v202_v35  ;;  %v266_v13 = vadd.f32 %v265_v43, %v2222_v51  ;;  %v292_v48 = vsel %vm163_vm0, %v2224_v47, 0.0  ;;  %v294_v53 = vsel %vm163_vm0, %v2225_v63, 0.0 }
  0x6e   :  { %v241_v18 = vadd.f32 %v240_v50, %v203_v39  ;;  %v254_v58 = vadd.f32 %v253_v20, %v204_v49  ;;  %v279_v32 = vadd.f32 %v278_v44, %v1814_v22  ;;  %v293_v7 = vadd.f32 %v292_v48, %v291_v42 }
  0x6f   :  { %v229_v56 = vadd.f32 %v228_v1, %v208_v54  ;;  %v267_v14 = vadd.f32 %v266_v13, %v205_v62  ;;  %v296_v8 = vsel %vm163_vm0, %v207_v33, 0.0  ;;  %v270_v47 = vsel %vm102_vm1, %v223_v24, 0.0 }
  0x70   :  { %v242_v57 = vadd.f32 %v241_v18, %v209_v28  ;;  %v255_v15 = vadd.f32 %v254_v58, %v210_v0  ;;  %v280_v35 = vadd.f32 %v279_v32, %v206_v12  ;;  %v295_v43 = vadd.f32 %v294_v53, %v293_v7 }
  0x71   :  { %v230_v51 = vadd.f32 %v229_v56, %v214_v40  ;;  %v268_v25 = vadd.f32 %v267_v14, %v211_v59  ;;  %v298_v20 = vsel %vm163_vm0, %v213_v11, 0.0  ;;  %v283_v44 = vsel %vm102_vm1, %v224_v5, 0.0 }
  0x72   :  { %v243_v39 = vadd.f32 %v242_v57, %v215_v41  ;;  %v256_v22 = vadd.f32 %v255_v15, %v216_v34  ;;  %v281_v49 = vadd.f32 %v280_v35, %v212_v60  ;;  %v297_v54 = vadd.f32 %v296_v8, %v295_v43 }
  0x73   :  { %v232_v62 = vadd.f32 %v231_v36, %v230_v51  ;;  %v269_v50 = vadd.f32 %v268_v25, %v217_v61  ;;  %v300_v33 = vsel %vm163_vm0, %v219_v37, 0.0  ;;  %v162_v59 = vadd.f32 %v161_v27, %v1828_v2 }
  0x74   :  { %v245_v18 = vadd.f32 %v244_v19, %v243_v39  ;;  %v258_v28 = vadd.f32 %v257_v21, %v256_v22  ;;  %v282_v12 = vadd.f32 %v281_v49, %v218_v38  ;;  %v299_v0 = vadd.f32 %v298_v20, %v297_v54 }
  0x75   :  { %v233_v40 = vrot.slane %v232_v62, 4  ;;  %v271_v24 = vadd.f32 %v270_v47, %v269_v50  ;;  %v302_v11 = vsel %vm175_vm2, %v225_v6, 0.0  ;;  %v183_v36 = vadd.f32 %v182_v45, %v1848_v52 }
  0x76   :  { %v246_v41 = vrot.slane %v245_v18, 4  ;;  %v259_v34 = vrot.slane %v258_v28, 4  ;;  %v284_v60 = vadd.f32 %v283_v44, %v282_v12  ;;  %v301_v1 = vadd.f32 %v300_v33, %v299_v0 }
  0x77   :  { %v234_v61 = vadd.f32 %v233_v40, %v232_v62  ;;  %v272_v5 = vrot.slane %v271_v24, 4  ;;  %v1915_v37 = vmul.f32 0.020408163, %v1842_v46  ;;  %v1918_v42 = vmul.f32 0.020408163, %v1844_v29 }
  0x78   :  { %v247_v19 = vadd.f32 %v246_v41, %v245_v18  ;;  %v260_v21 = vadd.f32 %v259_v34, %v258_v28  ;;  %v285_v38 = vrot.slane %v284_v60, 4  ;;  %v303_v13 = vadd.f32 %v302_v11, %v301_v1 }
  0x79   :  { %v235_v2 = vrot.slane %v234_v61, 2  ;;  %v273_v27 = vadd.f32 %v272_v5, %v271_v24  ;;  %v1921_v6 = vmul.f32 0.020408163, %v1846_v10  ;;  %v1924_v46 = vmul.f32 0.020408163, %v1850_v26 }
  0x7a   :  { %v248_v48 = vrot.slane %v247_v19, 2  ;;  %v261_v58 = vrot.slane %v260_v21, 2  ;;  %v286_v52 = vadd.f32 %v285_v38, %v284_v60  ;;  %v304_v45 = vrot.slane %v303_v13, 4 }
  0x7b   :  { %v236_v32 = vadd.f32 %v235_v2, %v234_v61  ;;  %v274_v7 = vrot.slane %v273_v27, 2  ;;  %v1926_v56 = vmul.f32 0.020408163, %v162_v59  ;;  %v1928_v15 = vmul.f32 0.020408163, %v183_v36 }
  0x7c   :  { %v249_v14 = vadd.f32 %v248_v48, %v247_v19  ;;  %v262_v63 = vadd.f32 %v261_v58, %v260_v21  ;;  %v287_v53 = vrot.slane %v286_v52, 2  ;;  %v305_v8 = vadd.f32 %v304_v45, %v303_v13 }
  0x7d   :  { %v237_v29 = vrot.slane %v236_v32, 1  ;;  %v275_v57 = vadd.f32 %v274_v7, %v273_v27  ;;  %v322_v10 = vmul.f32 %v1915_v37, %v1915_v37  ;;  %v323_v20 = vmul.f32 %v1918_v42, %v1918_v42 }
  0x7e   :  { %v250_v35 = vrot.slane %v249_v14, 1  ;;  %v263_v43 = vrot.slane %v262_v63, 1  ;;  %v288_v51 = vadd.f32 %v287_v53, %v286_v52  ;;  %v306_v25 = vrot.slane %v305_v8, 2 }
  0x7f   :  { %v238_v47 = vadd.f32 %v237_v29, %v236_v32  ;;  %v276_v26 = vrot.slane %v275_v57, 1  ;;  %v324_v39 = vmul.f32 %v1921_v6, %v1921_v6  ;;  %v325_v33 = vmul.f32 %v1924_v46, %v1924_v46 }
  0x80   :  { %v251_v22 = vadd.f32 %v250_v35, %v249_v14  ;;  %v264_v49 = vadd.f32 %v263_v43, %v262_v63  ;;  %v289_v54 = vrot.slane %v288_v51, 1  ;;  %v307_v62 = vadd.f32 %v306_v25, %v305_v8 }
  0x81   :  { %v277_v50 = vadd.f32 %v276_v26, %v275_v57  ;;  %v316_v44 = vmul.f32 0.020408163, %v238_v47  ;;  %v326_v18 = vmul.f32 %v1926_v56, %v1926_v56  ;;  %v327_v24 = vmul.f32 %v1928_v15, %v1928_v15 }
  0x82   :  { %v290_v28 = vadd.f32 %v289_v54, %v288_v51  ;;  %v308_v12 = vrot.slane %v307_v62, 1  ;;  %v317_v0 = vmul.f32 0.020408163, %v251_v22  ;;  %v318_v59 = vmul.f32 0.020408163, %v264_v49 }
  0x83   :  { %v319_v40 = vmul.f32 0.020408163, %v277_v50  ;;  %v328_v11 = vsub.f32 %v316_v44, %v322_v10  ;;  %v1546_v48 = vmov 1966171168   ;;  %v361_v52 = vlaneseq }
  0x84   :  { %v309_v41 = vadd.f32 %v308_v12, %v307_v62  ;;  %v320_v34 = vmul.f32 0.020408163, %v290_v28  ;;  %v329_v60 = vsub.f32 %v317_v0, %v323_v20  ;;  %v330_v1 = vsub.f32 %v318_v59, %v324_v39  ;;  %v346_v49 = vld [vmem:[#allocation5] ss:$2 sm:$0x3f] }
  0x85   :  { %v331_v36 = vsub.f32 %v319_v40, %v325_v33  ;;  %v334_v61 = vadd.f32 1e-05, %v328_v11  ;;  %v359_v58 = vunpack.c.l.s4 %v1546_v48  ;;  %v1942_v7 = vshrl.u32 %v361_v52, 7 }
  0x86   :  { %v321_v5 = vmul.f32 0.020408163, %v309_v41  ;;  %v332_v19 = vsub.f32 %v320_v34, %v326_v18  ;;  %v335_v21 = vadd.f32 1e-05, %v329_v60  ;;  %v336_v38 = vadd.f32 1e-05, %v330_v1 }
  0x87   :  { %v337_v13 = vadd.f32 1e-05, %v331_v36  ;;  %1428 = vrsqrt.f32 %v334_v61  ;;  %v360_v32 = vunpack.c.0.s8 %v359_v58  ;;  %v400_v54 = vsub.s32 0, %v1942_v7 }
  0x88   :  { %v333_v2 = vsub.f32 %v321_v5, %v327_v24  ;;  %v338_v27 = vadd.f32 1e-05, %v332_v19  ;;  %1430 = vrsqrt.f32 %v335_v21  ;;  %v404_v50 = vsub.s32 1, %v1942_v7 }
  0x89   :  { %1432 = vrsqrt.f32 %v336_v38  ;;  %v363_v63 = vsub.s32 %v360_v32, %v1942_v7  ;;  %v408_v44 = vsub.s32 2, %v1942_v7  ;;  %v412_v33 = vsub.s32 3, %v1942_v7 }
  0x8a   :  { %v339_v45 = vadd.f32 1e-05, %v333_v2  ;;  %1434 = vrsqrt.f32 %v337_v13  ;;  %v416_v18 = vsub.s32 4, %v1942_v7  ;;  %v420_v28 = vsub.s32 5, %v1942_v7  ;;  %v2253_v7 = vld [vmem:[#allocation28_spill] sm:$0xff] }
  0x8b   :  { %1436 = vrsqrt.f32 %v338_v27 }
  0x8c   :  { %1438 = vrsqrt.f32 %v339_v45 }
  0x91   :  { %v1429_v14 = vpop.eup %1428 }
  0x92   :  { %v1431_v53 = vpop.eup %1430 }
  0x93   :  { %v1433_v8 = vpop.eup %1432  ;;  %v355_v29 = vcombine.low %v1429_v14, %v1431_v53  ;;  %v2229_v14 = vld [vmem:[#allocation20_spill] sm:$0xff]  ;;  %v348_v53 = vld [vmem:[#allocation5 + $0x1] ss:$2 sm:$0x3f] }
  0x94   :  { %v1435_v57 = vpop.eup %1434 }
  0x95   :  { %v1437_v10 = vpop.eup %1436  ;;  %v356_v35 = vcombine.low %v1433_v8, %v1435_v57  ;;  %v364_v43 = vrot.slane %v355_v29, %v363_v63  ;;  %v2230_v8 = vld [vmem:[#allocation12_spill] sm:$0xff]  ;;  %v2231_v29 = vld [vmem:[#allocation17_spill] sm:$0xff] }
  0x96   :  { %v1439_v51 = vpop.eup %1438 }
  0x97   :  { %v357_v25 = vcombine.low %v1437_v10, %v1439_v51  ;;  %v371_v47 = vrot.slane %v356_v35, %v363_v63  ;;  %v2232_v10 = vld [vmem:[#allocation14_spill] sm:$0xff] }
  0x99   :  { %v378_v26 = vrot.slane %v357_v25, %v363_v63  ;;  %v379_v20 = vcombine.low %v364_v43, %v371_v47  ;;  %v2233_v43 = vld [vmem:[#allocation19_spill] sm:$0xff] }
  0x9a   :  { %v2234_v25 = vld [vmem:[#allocation23_spill] sm:$0xff] }
  0x9b   :  { %v386_v39 = vrot.slane %v379_v20, %v363_v63  ;;  %v393_v22 = vrot.slane %v378_v26, %v363_v63  ;;  %v2235_v20 = vld [vmem:[#allocation25_spill] sm:$0xff] }
  0x9d   :  { %v394_v62 = vcombine.low %v386_v39, %v393_v22 }
  0x9f   :  { %v396_v12 = vmul.f32 %v394_v62, %v346_v49  ;;  %v2236_v49 = vld [vmem:[#allocation22_spill] sm:$0xff] }
  0xa1   :  { %v1951_v0 = vrot.slane %v396_v12, %v400_v54  ;;  %v405_v59 = vrot.slane %v396_v12, %v404_v50  ;;  %v1953_v40 = vrot.slane %v396_v12, %v408_v44  ;;  %v413_v24 = vrot.slane %v396_v12, %v412_v33 }
  0xa2   :  { %v1957_v11 = vrot.slane %v396_v12, %v416_v18  ;;  %v1961_v41 = vrot.slane %v396_v12, %v420_v28  ;;  %v2237_v12 = vld [vmem:[#allocation27_spill] sm:$0xff] }
  0xa3   :  { %v428_v34 = vmul.f32 %v1951_v0, %v1915_v37  ;;  %v429_v60 = vmul.f32 %v405_v59, %v1918_v42  ;;  %v430_v1 = vmul.f32 %v1953_v40, %v1921_v6  ;;  %v431_v36 = vmul.f32 %v413_v24, %v1924_v46  ;;  %v2226_v42 = vld [vmem:[#allocation13_spill] sm:$0xff]  ;;  %v2227_v6 = vld [vmem:[#allocation18_spill] sm:$0xff]  ;;  %v2228_v46 = vld [vmem:[#allocation15_spill] sm:$0xff] }
  0xa4   :  { %v432_v61 = vmul.f32 %v1957_v11, %v1926_v56  ;;  %v433_v5 = vmul.f32 %v1961_v41, %v1928_v15  ;;  %v483_v58 = vmul.f32 %v405_v59, %v2226_v42  ;;  %v489_v45 = vmul.f32 %v405_v59, %v2227_v6 }
  0xa5   :  { %v440_v19 = vcombine.low %v428_v34, %v429_v60  ;;  %v441_v21 = vcombine.low %v430_v1, %v431_v36  ;;  %v485_v32 = vmul.f32 %v413_v24, %v2228_v46  ;;  %v491_v56 = vmul.f32 %v413_v24, %v2229_v14  ;;  %v2238_v60 = vld [vmem:[#allocation24_spill] sm:$0xff] }
  0xa6   :  { %v442_v38 = vcombine.low %v432_v61, %v433_v5  ;;  %v482_v15 = vmul.f32 %v1951_v0, %v2230_v8  ;;  %v488_v57 = vmul.f32 %v1951_v0, %v2231_v29  ;;  %v484_v35 = vmul.f32 %v1953_v40, %v2232_v10 }
  0xa7   :  { %v449_v13 = vrot.slane %v440_v19, %v363_v63  ;;  %v456_v2 = vrot.slane %v441_v21, %v363_v63  ;;  %v490_v51 = vmul.f32 %v1953_v40, %v2233_v43  ;;  %v495_v47 = vmul.f32 %v405_v59, %v2234_v25  ;;  %v1418_v43 = vld [vmem:[#allocation7 + $0x100] sm:$0xff]  }
  0xa8   :  { %v463_v27 = vrot.slane %v442_v38, %v363_v63  ;;  %v501_v26 = vmul.f32 %v405_v59, %v1683_v3  ;;  %v497_v39 = vmul.f32 %v413_v24, %v2235_v20  ;;  %v503_v22 = vmul.f32 %v413_v24, %v1693_v9 }
  0xa9   :  { %v464_v37 = vcombine.low %v449_v13, %v456_v2  ;;  %v494_v62 = vmul.f32 %v1951_v0, %v2236_v49  ;;  %v500_v34 = vmul.f32 %v1951_v0, %v2237_v12  ;;  %v496_v1 = vmul.f32 %v1953_v40, %v2238_v60  ;;  %v2240_v13 = vld [vmem:[#allocation33_spill] sm:$0xff] }
  0xaa   :  { %v478_v48 = vrot.slane %v463_v27, %v363_v63  ;;  %v502_v61 = vmul.f32 %v1953_v40, %v1685_v4  ;;  %v507_v3 = vmul.f32 %v405_v59, %v1704_v17  ;;  %v513_v5 = vmul.f32 %v405_v59, %v1727_v31  ;;  %v2241_v2 = vld [vmem:[#allocation37_spill] sm:$0xff]  ;;  %v2242_v27 = vld [vmem:[#allocation39_spill] sm:$0xff] }
  0xab   :  { %v471_v52 = vrot.slane %v464_v37, %v363_v63  ;;  %v2002_v9 = vmul.f32 %v413_v24, %v1716_v23  ;;  %v2005_v19 = vmul.f32 %v413_v24, %v1739_v55  ;;  %v2009_v21 = vmul.f32 %v1951_v0, %v1702_v16  ;;  %v2239_v55 = vld [vmem:[#allocation29_spill] sm:$0xff] }
  0xac   :  { %v2013_v38 = vmul.f32 %v1951_v0, %v1725_v30  ;;  %v2029_v16 = vmul.f32 %v1953_v40, %v2239_v55  ;;  %v2033_v30 = vmul.f32 %v1953_v40, %v2240_v13 }
  0xad   :  { %v479_v63 = vcombine.low %v471_v52, %v478_v48 }
  0xaf   :  { %v1995_v36 = vsub.f32 %v348_v53, %v479_v63 }
  0xb1   :  { %v2016_v4 = vrot.slane %v1995_v36, %v404_v50  ;;  %v2019_v17 = vrot.slane %v1995_v36, %v412_v33  ;;  %v2022_v23 = vrot.slane %v1995_v36, %v400_v54  ;;  %v2025_v31 = vrot.slane %v1995_v36, %v408_v44 }
  0xb2   :  { %v2036_v50 = vmul.f32 %v405_v59, %v2241_v2  ;;  %v2039_v33 = vmul.f32 %v413_v24, %v2242_v27 }
  0xb3   :  { %v556_v54 = vadd.f32 %v2016_v4, %v483_v58  ;;  %v562_v37 = vadd.f32 %v2016_v4, %v489_v45  ;;  %v558_v44 = vadd.f32 %v2019_v17, %v485_v32  ;;  %v564_v48 = vadd.f32 %v2019_v17, %v491_v56 }
  0xb4   :  { %v555_v42 = vadd.f32 %v2022_v23, %v482_v15  ;;  %v561_v52 = vadd.f32 %v2022_v23, %v488_v57  ;;  %v557_v6 = vadd.f32 %v2025_v31, %v484_v35  ;;  %v563_v59 = vadd.f32 %v2025_v31, %v490_v51 }
  0xb5   :  { %v598_v46 = vmax.f32 %v556_v54, 0.0  ;;  %v604_v14 = vmax.f32 %v562_v37, 0.0  ;;  %v600_v24 = vmax.f32 %v558_v44, 0.0  ;;  %v606_v53 = vmax.f32 %v564_v48, 0.0 }
  0xb6   :  { %v597_v8 = vmax.f32 %v555_v42, 0.0  ;;  %v603_v58 = vmax.f32 %v561_v52, 0.0  ;;  %v599_v29 = vmax.f32 %v557_v6, 0.0  ;;  %v605_v45 = vmax.f32 %v563_v59, 0.0 }
  0xb7   :  { %v640_v10 = vpack.c.bf16 %v604_v14, %v598_v46  ;;  %v642_v32 = vpack.c.bf16 %v606_v53, %v600_v24  ;;  %v568_v56 = vadd.f32 %v2016_v4, %v495_v47  ;;  %v574_v15 = vadd.f32 %v2016_v4, %v501_v26  ;;  %v2244_v24 = vld [vmem:[#allocation36_spill] sm:$0xff]  ;;  %v2245_v53 = vld [vmem:[#allocation38_spill] sm:$0xff] }
  0xb8   :  { %v639_v57 = vpack.c.bf16 %v603_v58, %v597_v8  ;;  %v641_v63 = vpack.c.bf16 %v605_v45, %v599_v29  ;;  %v570_v35 = vadd.f32 %v2019_v17, %v497_v39  ;;  %v576_v51 = vadd.f32 %v2019_v17, %v503_v22  ;;  %v1419_v39 = vld [vmem:[#allocation7 + $0x108] sm:$0xff]  }
  0xb9   :  { %1043 = vmatprep.mubr.bf16.mxu0 %v640_v10  ;;  %1107 = vmatprep.mubr.bf16.mxu1 %v642_v32  ;;  %v610_v25 = vmax.f32 %v568_v56, 0.0  ;;  %v616_v20 = vmax.f32 %v574_v15, 0.0  ;;  %v567_v49 = vadd.f32 %v2022_v23, %v494_v62  ;;  %v573_v12 = vadd.f32 %v2022_v23, %v500_v34  ;;  %v2247_v56 = vld [vmem:[#allocation21_spill] sm:$0xff]  ;;  %v2248_v15 = vld [vmem:[#allocation32_spill] sm:$0xff] }
  0xba   :  { %1044 = vmatmul.mubr.bf16.vlgmr.msra.gmra.mrb[0].mxu0 %v639_v57  ;;  %1108 = vmatmul.mubr.bf16.vlgmr.msra.gmra.mrb[0].mxu1 %v641_v63  ;;  %v612_v60 = vmax.f32 %v570_v35, 0.0  ;;  %v618_v47 = vmax.f32 %v576_v51, 0.0  ;;  %v569_v26 = vadd.f32 %v2025_v31, %v496_v1  ;;  %v575_v55 = vadd.f32 %v2025_v31, %v502_v61  ;;  %v2249_v63 = vld [vmem:[#allocation35_spill] sm:$0xff] }
  0xbb   :  { %1140 = vmatpush1.bf16.msra.mxu0 %v1418_v43  ;;  %1364 = vmatpush1.bf16.msra.mxu1 %v1418_v43  ;;  %v646_v22 = vpack.c.bf16 %v616_v20, %v610_v25  ;;  %v609_v13 = vmax.f32 %v567_v49, 0.0  ;;  %v615_v2 = vmax.f32 %v573_v12, 0.0  ;;  %v580_v27 = vadd.f32 %v2016_v4, %v507_v3 }
  0xbc   :  { %v2243_v54 = vmov 0   ;;  %v648_v62 = vpack.c.bf16 %v618_v47, %v612_v60  ;;  %v611_v34 = vmax.f32 %v569_v26, 0.0  ;;  %v617_v37 = vmax.f32 %v575_v55, 0.0 }
  0xbd   :  { %1141 = vmatprep.subr.bf16.mxu0 %v2243_v54  ;;  %1355 = vmatprep.subr.bf16.mxu1 %v2243_v54  ;;  %v586_v44 = vadd.f32 %v2016_v4, %v513_v5  ;;  %v645_v1 = vpack.c.bf16 %v615_v2, %v609_v13  ;;  %v622_v61 = vmax.f32 %v580_v27, 0.0  ;;  %v582_v48 = vadd.f32 %v2019_v17, %v2002_v9  ;;  %v1420_v5 = vld [vmem:[#allocation7 + $0x110] sm:$0xff]  }
  0xbe   :  { %1051 = vmatprep.mubr.bf16.mxu0 %v646_v22  ;;  %v588_v42 = vadd.f32 %v2019_v17, %v2005_v19  ;;  %1115 = vmatprep.mubr.bf16.mxu1 %v648_v62  ;;  %v647_v3 = vpack.c.bf16 %v617_v37, %v611_v34  ;;  %v579_v6 = vadd.f32 %v2022_v23, %v2009_v21  ;;  %v1423_v22 = vld [vmem:[#allocation7 + $0x128] sm:$0xff]  }
  0xbf   :  { %v628_v52 = vmax.f32 %v586_v44, 0.0  ;;  %v585_v59 = vadd.f32 %v2022_v23, %v2013_v38  ;;  %1142 = vmatpush1.bf16.msra.mxu0 %v1419_v39  ;;  %1365 = vmatpush1.bf16.msra.mxu1 %v1419_v39  ;;  %v624_v46 = vmax.f32 %v582_v48, 0.0  ;;  %v581_v9 = vadd.f32 %v2025_v31, %v2029_v16  ;;  %v1424_v44 = vld [vmem:[#allocation7 + $0x130] sm:$0xff]   ;;  %v1440_v48 = vld [vmem:[#allocation2 + $0x20] sm:$0xff] }
  0xc0   :  { %v630_v14 = vmax.f32 %v588_v42, 0.0  ;;  %v587_v19 = vadd.f32 %v2025_v31, %v2033_v30  ;;  %1143 = vmatprep.subr.bf16.mxu0 %v2243_v54  ;;  %1356 = vmatprep.subr.bf16.mxu1 %v2243_v54  ;;  %v518_v21 = vmul.f32 %v1951_v0, %v2244_v24  ;;  %v520_v38 = vmul.f32 %v1953_v40, %v2245_v53  ;;  %v1421_v0 = vld [vmem:[#allocation7 + $0x118] sm:$0xff]   ;;  %v2246_v40 = vld [vmem:[#allocation16_spill] sm:$0xff] }
  0xc1   :  { %v652_v8 = vpack.c.bf16 %v628_v52, %v622_v61  ;;  %v621_v29 = vmax.f32 %v579_v6, 0.0  ;;  %v592_v45 = vadd.f32 %v2016_v4, %v2036_v50  ;;  %v627_v16 = vmax.f32 %v585_v59, 0.0  ;;  %v1441_v52 = vld [vmem:[#allocation2 + $0x50] sm:$0xff]  ;;  %v2250_v59 = vld [vmem:[#allocation31_spill] sm:$0xff] }
  0xc2   :  { %v654_v58 = vpack.c.bf16 %v630_v14, %v624_v46  ;;  %1052 = vmatmul.mubr.bf16.gmra.mrb[4].mxu0 %v645_v1  ;;  %1116 = vmatmul.mubr.bf16.gmra.mrb[4].mxu1 %v647_v3  ;;  %v623_v30 = vmax.f32 %v581_v9, 0.0  ;;  %v629_v10 = vmax.f32 %v587_v19, 0.0  ;;  %v594_v32 = vadd.f32 %v2019_v17, %v2039_v33  ;;  %v2251_v46 = vld [vmem:[#allocation34_spill] sm:$0xff] }
  0xc3   :  { %1144 = vmatpush1.bf16.msra.mxu0 %v1420_v5  ;;  %1366 = vmatpush1.bf16.msra.mxu1 %v1420_v5  ;;  %v487_v43 = vmul.f32 %v1961_v41, %v2246_v40  ;;  %v493_v4 = vmul.f32 %v1961_v41, %v2247_v56  ;;  %v2092_v50 = vrot.slane %v1995_v36, %v420_v28  ;;  %v634_v17 = vmax.f32 %v592_v45, 0.0  ;;  %v1422_v28 = vld [vmem:[#allocation7 + $0x120] sm:$0xff]   ;;  %v1425_v9 = vld [vmem:[#allocation7 + $0x138] sm:$0xff]  }
  0xc4   :  { %1145 = vmatprep.subr.bf16.mxu0 %v2243_v54  ;;  %1357 = vmatprep.subr.bf16.mxu1 %v2243_v54  ;;  %v636_v33 = vmax.f32 %v594_v32, 0.0  ;;  %v511_v57 = vmul.f32 %v1961_v41, %v2248_v15  ;;  %v517_v35 = vmul.f32 %v1961_v41, %v2249_v63  ;;  %v651_v51 = vpack.c.bf16 %v627_v16, %v621_v29  ;;  %v2252_v19 = vld [vmem:[#allocation26_spill] sm:$0xff]  ;;  %v1426_v29 = vld [vmem:[#allocation7 + $0x140] sm:$0xff]  }
  0xc5   :  { %1059 = vmatprep.mubr.bf16.mxu0 %v652_v8  ;;  %1123 = vmatprep.mubr.bf16.mxu1 %v654_v58  ;;  %v653_v25 = vpack.c.bf16 %v629_v10, %v623_v30  ;;  %v591_v20 = vadd.f32 %v2022_v23, %v518_v21  ;;  %v593_v49 = vadd.f32 %v2025_v31, %v520_v38  ;;  %v1442_v10 = vld [vmem:[#allocation2 + $0x80] sm:$0xff] }
  0xc6   :  { %v560_v12 = vadd.f32 %v2092_v50, %v487_v43  ;;  %v566_v60 = vadd.f32 %v2092_v50, %v493_v4  ;;  %v658_v47 = vpack.c.bf16 %v634_v17, %v634_v17  ;;  %v660_v26 = vpack.c.bf16 %v636_v33, %v636_v33  ;;  %v2255_v17 = vld [vmem:[#allocation40_spill] sm:$0xff] }
  0xc7   :  { %1146 = vmatpush1.bf16.msra.mxu0 %v1421_v0  ;;  %1367 = vmatpush1.bf16.msra.mxu1 %v1421_v0  ;;  %v584_v55 = vadd.f32 %v2092_v50, %v511_v57  ;;  %v590_v39 = vadd.f32 %v2092_v50, %v517_v35  ;;  %v633_v23 = vmax.f32 %v591_v20, 0.0  ;;  %v635_v31 = vmax.f32 %v593_v49, 0.0  ;;  %v1443_v0 = vld [vmem:[#allocation2 + $0xb0] sm:$0xff] }
  0xc8   :  { %1147 = vmatprep.subr.bf16.mxu0 %v2243_v54  ;;  %1358 = vmatprep.subr.bf16.mxu1 %v2243_v54  ;;  %v602_v13 = vmax.f32 %v560_v12, 0.0  ;;  %v608_v2 = vmax.f32 %v566_v60, 0.0  ;;  %v486_v42 = vmul.f32 %v1440_v48, %v1957_v11  ;;  %v544_v3 = vrot.slane %v1995_v36, %v416_v18  ;;  %v2254_v36 = vld [vmem:[#allocation41_spill] sm:$0xff] }
  0xc9   :  { %v626_v27 = vmax.f32 %v584_v55, 0.0  ;;  %v632_v62 = vmax.f32 %v590_v39, 0.0  ;;  %v657_v34 = vpack.c.bf16 %v633_v23, %v633_v23  ;;  %v659_v37 = vpack.c.bf16 %v635_v31, %v635_v31 }
  0xca   :  { %1060 = vmatmul.mubr.bf16.gmra.mrb[8].mxu0 %v651_v51  ;;  %1124 = vmatmul.mubr.bf16.gmra.mrb[8].mxu1 %v653_v25  ;;  %v644_v1 = vpack.c.bf16 %v608_v2, %v602_v13  ;;  %v492_v6 = vmul.f32 %v1441_v52, %v1957_v11  ;;  %v510_v5 = vmul.f32 %v1957_v11, %v2250_v59 }
  0xcb   :  { %1148 = vmatpush1.bf16.msra.mxu0 %v1422_v28  ;;  %1368 = vmatpush1.bf16.msra.mxu1 %v1422_v28  ;;  %v656_v61 = vpack.c.bf16 %v632_v62, %v626_v27  ;;  %v516_v14 = vmul.f32 %v1957_v11, %v2251_v46  ;;  %v499_v24 = vmul.f32 %v1961_v41, %v2252_v19 }
  0xcc   :  { %1149 = vmatprep.subr.bf16.mxu0 %v2243_v54  ;;  %1359 = vmatprep.subr.bf16.mxu1 %v2243_v54  ;;  %v505_v18 = vmul.f32 %v1961_v41, %v2253_v7  ;;  %v523_v21 = vmul.f32 %v1961_v41, %v2254_v36  ;;  %v559_v53 = vadd.f32 %v544_v3, %v486_v42 }
  0xcd   :  { %1067 = vmatprep.mubr.bf16.mxu0 %v658_v47  ;;  %1131 = vmatprep.mubr.bf16.mxu1 %v660_v26  ;;  %v565_v38 = vadd.f32 %v544_v3, %v492_v6  ;;  %v583_v8 = vadd.f32 %v544_v3, %v510_v5  ;;  %v589_v58 = vadd.f32 %v544_v3, %v516_v14 }
  0xce   :  { %v572_v45 = vadd.f32 %v2092_v50, %v499_v24  ;;  %v578_v16 = vadd.f32 %v2092_v50, %v505_v18  ;;  %v596_v41 = vadd.f32 %v2092_v50, %v523_v21  ;;  %v601_v30 = vmax.f32 %v559_v53, 0.0  ;;  %v1427_v50 = vld [vmem:[#allocation7 + $0x148] sm:$0xff]  }
  0xcf   :  { %1150 = vmatpush1.bf16.msra.mxu0 %v1423_v22  ;;  %1369 = vmatpush1.bf16.msra.mxu1 %v1423_v22  ;;  %v498_v32 = vmul.f32 %v1442_v10, %v1957_v11  ;;  %v504_v40 = vmul.f32 %v1443_v0, %v1957_v11  ;;  %v607_v43 = vmax.f32 %v565_v38, 0.0  ;;  %v625_v56 = vmax.f32 %v583_v8, 0.0 }
  0xd0   :  { %1151 = vmatprep.subr.bf16.mxu0 %v2243_v54  ;;  %1360 = vmatprep.subr.bf16.mxu1 %v2243_v54  ;;  %v631_v4 = vmax.f32 %v589_v58, 0.0  ;;  %v522_v33 = vmul.f32 %v1957_v11, %v2255_v17  ;;  %v614_v15 = vmax.f32 %v572_v45, 0.0  ;;  %v620_v57 = vmax.f32 %v578_v16, 0.0 }
  0xd1   :  { %v638_v63 = vmax.f32 %v596_v41, 0.0  ;;  %v571_v35 = vadd.f32 %v544_v3, %v498_v32  ;;  %v643_v51 = vpack.c.bf16 %v607_v43, %v601_v30  ;;  %v577_v20 = vadd.f32 %v544_v3, %v504_v40 }
  0xd2   :  { %1068 = vmatmul.mubr.bf16.gmra.mrb[12].mxu0 %v657_v34  ;;  %1132 = vmatmul.mubr.bf16.gmra.mrb[12].mxu1 %v659_v37  ;;  %v655_v25 = vpack.c.bf16 %v631_v4, %v625_v56  ;;  %v595_v49 = vadd.f32 %v544_v3, %v522_v33  ;;  %v650_v28 = vpack.c.bf16 %v620_v57, %v614_v15 }
  0xd3   :  { %1152 = vmatpush1.bf16.msra.mxu0 %v1424_v44  ;;  %1370 = vmatpush1.bf16.msra.mxu1 %v1424_v44  ;;  %v662_v12 = vpack.c.bf16 %v638_v63, %v638_v63  ;;  %v613_v11 = vmax.f32 %v571_v35, 0.0  ;;  %v619_v60 = vmax.f32 %v577_v20, 0.0 }
  0xd4   :  { %1153 = vmatprep.subr.bf16.mxu0 %v2243_v54  ;;  %1361 = vmatprep.subr.bf16.mxu1 %v2243_v54  ;;  %v637_v47 = vmax.f32 %v595_v49, 0.0 }
  0xd5   :  { %1270 = vmatprep.mubr.msk.bf16.mxu0 %vm163_vm0, %v644_v1  ;;  %1272 = vmatprep.mubr.msk.bf16.mxu1 %vm163_vm0, %v656_v61  ;;  %v649_v26 = vpack.c.bf16 %v619_v60, %v613_v11 }
  0xd7   :  { %1154 = vmatpush1.bf16.msra.mxu0 %v1425_v9  ;;  %1371 = vmatpush1.bf16.msra.mxu1 %v1425_v9 }
  0xd8   :  { %1155 = vmatprep.subr.bf16.mxu0 %v2243_v54  ;;  %1362 = vmatprep.subr.bf16.mxu1 %v2243_v54 }
  0xdb   :  { %1156 = vmatpush1.bf16.msra.mxu0 %v1426_v29  ;;  %1372 = vmatpush1.bf16.msra.mxu1 %v1426_v29 }
  0xdc   :  { %1157 = vmatprep.subr.bf16.mxu0 %v2243_v54  ;;  %1363 = vmatprep.subr.bf16.mxu1 %v2243_v54  ;;  %v661_v54 = vpack.c.bf16 %v637_v47, %v637_v47 }
  0xdf   :  { %1158 = vmatpush1.bf16.msra.mxu0 %v1427_v50  ;;  %1373 = vmatpush1.bf16.msra.mxu1 %v1427_v50 }
  0xe2   :  { %1172 = vmatmul.mubr.bf16.vlgmr.msra.gmra.mrb[16].mxu0 %v643_v51  ;;  %1188 = vmatmul.mubr.bf16.vlgmr.msra.gmra.mrb[16].mxu1 %v655_v25 }
  0xe3   :  { %1271 = vmatprep.mubr.msk.bf16.mxu0 %vm163_vm0, %v650_v28  ;;  %1273 = vmatprep.mubr.msk.bf16.mxu1 %vm163_vm0, %v662_v12 }
  0xea   :  { %1180 = vmatmul.mubr.bf16.gmra.mrb[20].mxu0 %v649_v26  ;;  %1196 = vmatmul.mubr.bf16.gmra.mrb[20].mxu1 %v661_v54 }
 0x18d   :  { %v1290_v55 = vpop.f32.mrb[0].mxu0  ;;  %v1330_v39 = vpop.f32.mrb[0].mxu1 }
 0x18e   :  { %v1291_v23 = vpop.f32.mrb[1].mxu0  ;;  %v1331_v31 = vpop.f32.mrb[1].mxu1 }
 0x18f   :  { %v1292_v22 = vadd.f32 %v1291_v23, %v1290_v55  ;;  %v1332_v13 = vadd.f32 %v1331_v31, %v1330_v39  ;;  %v1293_v2 = vpop.f32.mrb[2].mxu0  ;;  %v1333_v27 = vpop.f32.mrb[2].mxu1 }
 0x190   :  { %v1294_v62 = vpop.f32.mrb[3].mxu0  ;;  %v1334_v34 = vpop.f32.mrb[3].mxu1 }
 0x191   :  { %v1295_v37 = vadd.f32 %v1294_v62, %v1293_v2  ;;  %v1335_v44 = vadd.f32 %v1334_v34, %v1333_v27  ;;  %v1110_v1 = vadd.f32 %v1332_v13, %v1292_v22 }
 0x193   :  { %v1113_v61 = vadd.f32 %v1335_v44, %v1295_v37 }
 0x195   :  { %v1296_v48 = vpop.f32.mrb[4].mxu0  ;;  %v1336_v42 = vpop.f32.mrb[4].mxu1 }
 0x196   :  { %v1297_v3 = vpop.f32.mrb[5].mxu0  ;;  %v1337_v52 = vpop.f32.mrb[5].mxu1 }
 0x197   :  { %v1298_v6 = vadd.f32 %v1297_v3, %v1296_v48  ;;  %v1338_v59 = vadd.f32 %v1337_v52, %v1336_v42  ;;  %v1299_v5 = vpop.f32.mrb[6].mxu0  ;;  %v1339_v46 = vpop.f32.mrb[6].mxu1 }
 0x198   :  { %v1300_v14 = vpop.f32.mrb[7].mxu0  ;;  %v1340_v9 = vpop.f32.mrb[7].mxu1 }
 0x199   :  { %v1301_v19 = vadd.f32 %v1300_v14, %v1299_v5  ;;  %v1341_v24 = vadd.f32 %v1340_v9, %v1339_v46  ;;  %v1118_v7 = vadd.f32 %v1338_v59, %v1298_v6 }
 0x19b   :  { %v1121_v18 = vadd.f32 %v1341_v24, %v1301_v19 }
 0x19d   :  { %v1302_v36 = vpop.f32.mrb[8].mxu0  ;;  %v1342_v21 = vpop.f32.mrb[8].mxu1 }
 0x19e   :  { %v1303_v53 = vpop.f32.mrb[9].mxu0  ;;  %v1343_v38 = vpop.f32.mrb[9].mxu1 }
 0x19f   :  { %v1304_v8 = vadd.f32 %v1303_v53, %v1302_v36  ;;  %v1344_v58 = vadd.f32 %v1343_v38, %v1342_v21  ;;  %v1305_v29 = vpop.f32.mrb[10].mxu0  ;;  %v1345_v45 = vpop.f32.mrb[10].mxu1 }
 0x1a0   :  { %v1306_v16 = vpop.f32.mrb[11].mxu0  ;;  %v1346_v41 = vpop.f32.mrb[11].mxu1 }
 0x1a1   :  { %v1307_v30 = vadd.f32 %v1306_v16, %v1305_v29  ;;  %v1347_v10 = vadd.f32 %v1346_v41, %v1345_v45  ;;  %v1126_v32 = vadd.f32 %v1344_v58, %v1304_v8 }
 0x1a3   :  { %v1129_v0 = vadd.f32 %v1347_v10, %v1307_v30 }
 0x1a5   :  { %v1308_v40 = vpop.f32.mrb[12].mxu0  ;;  %v1348_v43 = vpop.f32.mrb[12].mxu1 }
 0x1a6   :  { %v1309_v56 = vpop.f32.mrb[13].mxu0  ;;  %v1349_v4 = vpop.f32.mrb[13].mxu1 }
 0x1a7   :  { %v1310_v17 = vadd.f32 %v1309_v56, %v1308_v40  ;;  %v1311_v33 = vpop.f32.mrb[14].mxu0  ;;  %v1350_v50 = vadd.f32 %v1349_v4, %v1348_v43  ;;  %v1351_v15 = vpop.f32.mrb[14].mxu1 }
 0x1a8   :  { %v1312_v57 = vpop.f32.mrb[15].mxu0  ;;  %v1352_v63 = vpop.f32.mrb[15].mxu1 }
 0x1a9   :  { %v1134_v35 = vadd.f32 %v1350_v50, %v1310_v17 }
 0x1b5   :  { %v1173_v51 = vpop.f32.mrb[16].mxu0  ;;  %v1189_v25 = vpop.f32.mrb[16].mxu1 }
 0x1b6   :  { %v1174_v20 = vadd.f32 %v1173_v51, %v1110_v1  ;;  %v1190_v49 = vadd.f32 %v1189_v25, %v1126_v32  ;;  %v1175_v28 = vpop.f32.mrb[17].mxu0  ;;  %v1191_v12 = vpop.f32.mrb[17].mxu1 }
 0x1b7   :  { %v1176_v11 = vpop.f32.mrb[18].mxu0  ;;  %v1192_v60 = vpop.f32.mrb[18].mxu1 }
 0x1b8   :  { %1203 = vst [vmem:[#allocation8] sm:$0xff] %v1174_v20  ;;  %1207 = vst [vmem:[#allocation8 + $0x20] sm:$0xff] %v1190_v49  ;;  %v1177_v47 = vadd.f32 %v1176_v11, %v1113_v61  ;;  %v1193_v26 = vadd.f32 %v1192_v60, %v1129_v0  ;;  %v1178_v54 = vpop.f32.mrb[19].mxu0  ;;  %v1194_v55 = vpop.f32.mrb[19].mxu1 }
 0x1ba   :  { %1204 = vst [vmem:[#allocation8 + $0x8] sm:$0xff] %v1177_v47  ;;  %1208 = vst [vmem:[#allocation8 + $0x28] sm:$0xff] %v1193_v26 }
 0x1bd   :  { %v1181_v39 = vpop.f32.mrb[20].mxu0  ;;  %v1197_v23 = vpop.f32.mrb[20].mxu1 }
 0x1be   :  { %v1182_v31 = vadd.f32 %v1181_v39, %v1118_v7  ;;  %v1198_v22 = vadd.f32 %v1197_v23, %v1134_v35  ;;  %v1183_v13 = vpop.f32.mrb[21].mxu0  ;;  %v1199_v2 = vpop.f32.mrb[21].mxu1 }
 0x1bf   :  { %v1184_v27 = vpop.f32.mrb[22].mxu0  ;;  %v1200_v62 = vpop.f32.mrb[22].mxu1 }
 0x1c0   :  { %1205 = vst [vmem:[#allocation8 + $0x10] sm:$0xff] %v1182_v31  ;;  %1209 = vst [vmem:[#allocation8 + $0x30] sm:$0x1] %v1198_v22  ;;  %v1185_v34 = vadd.f32 %v1184_v27, %v1121_v18  ;;  %v1186_v37 = vpop.f32.mrb[23].mxu0  ;;  %v1201_v44 = vpop.f32.mrb[23].mxu1 }
 0x1c2   :  { %1206 = vst [vmem:[#allocation8 + $0x18] sm:$0xff] %v1185_v34 }
 0x1c3   :  { %1521 = shalt.err (!%p1518_p0)
}
 0x1c4   :  { %s1522_s27 = scalar_lea.hbm %s2157_s3, 896 }
 0x1c5   :  { %p1523_p1 = scmp.ne.s32.totalorder %s2157_s3, %s1522_s27  ;;  %p1526_p2 = scmp.lt.u32.totalorder %s1522_s27, %s2157_s3 }
 0x1c7   :  { %p1528_p3 = pnand %p1526_p2, %p1523_p1 }
 0x1c9   :  { %1531 = shalt.err (!%p1528_p3)
}
 0x1ca   :  { %s1548_s5 = smov 128   ;;  %s1549_s6 = smov 8  }
 0x1cb   :  { %1221 = dma.vmem_to_hbm [thread:$0]  %s1216_s23, 896, %s2157_s3, [#allocation4], %s1548_s5, %s1548_s5, %s1549_s6  }
 0x1cc   :  { %1536 = dma.done.wait [#allocation4], 896  }
 0x1cd   :  { %1537 = vsyncadd [#allocation4], 4294966400 }
 0x1ce   :  { %1225 = vsyncpa [#allocation3], 1 }
 0x1cf   :  { %1226 = vsyncpa [#allocation6], 1 }
 0x1d0   :  { %1227 = vsyncpa [#allocation4], 1 }

</bundles_post_ra>
